<compile_context>
chip_gen: v6e
topology: v6e:2x2x1
jax: 0.10.0
libtpu: 0.0.40
codegen_flags: <defaults>
</compile_context>

<pallas_src>
import numpy as np
import jax
import jax.numpy as jnp
from jax.experimental import pallas as pl
from jax.experimental.pallas import tpu as pltpu


def diffusion_p_losses_kernel(csac_ref, sr_ref, hr_ref, noise_ref,
                              w_ref, bias_ref, wt_ref, loss_ref):
    # csac_ref  : SMEM (B,)       f32  per-batch continuous_sqrt_alpha_cumprod (gamma)
    # sr_ref    : VMEM (B*C, H*W) f32  x_in['SR'] condition (reshape-only view)
    # hr_ref    : VMEM (B*C, H*W) f32  x_in['HR'] (x_start)
    # noise_ref : VMEM (B*C, H*W) f32  noise
    # w_ref     : VMEM (C, 2C)    f32  denoise_fn stand-in 1x1-conv weight
    # bias_ref  : VMEM (C, 1)     f32  conv bias
    # wt_ref    : VMEM (C, 1)     f32  noise-level embedding weight
    # loss_ref  : SMEM (1, 1)     f32  scalar L1(reduction='sum') loss
    BC, HW = sr_ref.shape
    C = w_ref.shape[0]
    B = BC // C

    sr = sr_ref[...]          # single full-tile loads (each is one (8, 256) tile here)
    hr = hr_ref[...]
    nz = noise_ref[...]
    w = w_ref[...]            # (C, 2C)
    bias = bias_ref[...]      # (C, 1)
    wt = wt_ref[...]          # (C, 1)

    total = jnp.float32(0.0)
    for b in range(B):        # B=2: static unroll, two tiny dots
        g = csac_ref[b]                                   # scalar gamma_b from SMEM
        gv = jnp.full((1, HW), g, dtype=jnp.float32)      # lane-broadcast gamma row
        sv = jnp.sqrt(jnp.maximum(1.0 - gv * gv, 0.0))    # EUP: sqrt(1 - gamma^2)

        sr_b = sr[b * C:(b + 1) * C, :]                   # (C, HW) static row slices
        hr_b = hr[b * C:(b + 1) * C, :]
        nz_b = nz[b * C:(b + 1) * C, :]

        # q_sample: x_noisy = gamma * x_start + sqrt(1 - gamma^2) * noise
        x_noisy = gv * hr_b + sv * nz_b                   # (C, HW), 2 muls + 1 add

        # denoise_fn stand-in on torch.cat([SR, x_noisy], dim=1):
        #   y = W @ [SR; x_noisy] + bias + wt * gamma
        # Note: default TPU matmul precision may truncate operands to bf16 on the MXU;
        # acceptable at the test tolerance (pass precision=HIGHEST if tighter is needed).
        x_cat = jnp.concatenate([sr_b, x_noisy], axis=0)  # (2C, HW)
        y = jnp.dot(w, x_cat, preferred_element_type=jnp.float32)   # (C, HW) MXU
        y = y + bias + wt * g                             # tiny VPU epilogue

        # L1Loss(reduction='sum') partial for this batch element
        total = total + jnp.sum(jnp.abs(nz_b - y))

    loss_ref[0, 0] = total


def gaussian_diffusion_p_losses(hr, sr, noise, csac, w, bias, wt):
    """GaussianDiffusion.forward == p_losses (conditional=True, loss_type='l1').

    hr/sr/noise: (B, C, H, W) f32; csac: (B, 1) f32 continuous_sqrt_alpha_cumprod;
    w: (C, 2C), bias/wt: (C,) -- deterministic denoise_fn stand-in parameters.
    """
    B, C, H, W = hr.shape
    HW = H * W

    # Metadata-only reshapes (row-major, no transpose, no concat): batch*channel on
    # sublanes, H*W (=256, lane-dense multiple of 128) on lanes.
    sr2 = sr.reshape(B * C, HW)
    hr2 = hr.reshape(B * C, HW)
    nz2 = noise.reshape(B * C, HW)
    csac1 = csac.reshape(B).astype(jnp.float32)

    vmem = pl.BlockSpec(memory_space=pltpu.MemorySpace.VMEM)
    smem = pl.BlockSpec(memory_space=pltpu.MemorySpace.SMEM)

    loss = pl.pallas_call(
        diffusion_p_losses_kernel,
        out_shape=jax.ShapeDtypeStruct((1, 1), jnp.float32),
        in_specs=[smem, vmem, vmem, vmem, vmem, vmem, vmem],
        out_specs=smem,
    )(csac1, sr2, hr2, nz2, w, bias.reshape(C, 1), wt.reshape(C, 1))
    return loss[0, 0]


if __name__ == "__main__":
    B, C, H, W = 2, 4, 16, 16
    n_timestep = 32
    linear_start, linear_end = 1e-4, 2e-2

    # make_beta_schedule('linear') + cumulative products (host-side glue, as in
    # set_new_noise_schedule)
    betas = np.linspace(linear_start, linear_end, n_timestep, dtype=np.float64)
    alphas = 1.0 - betas
    alphas_cumprod = np.cumprod(alphas, axis=0)
    sqrt_alphas_cumprod_prev = np.sqrt(np.append(1.0, alphas_cumprod))

    key = jax.random.PRNGKey(0)
    k_hr, k_sr, k_noise, k_t, k_u, k_w, k_b, k_wt = jax.random.split(key, 8)

    hr = jax.random.normal(k_hr, (B, C, H, W), jnp.float32)        # x_in['HR']
    sr = jax.random.normal(k_sr, (B, C, H, W), jnp.float32)        # x_in['SR'] (condition)
    noise = jax.random.normal(k_noise, (B, C, H, W), jnp.float32)

    # t ~ randint(1, num_timesteps+1); gamma ~ U[sqrt_acp_prev[t-1], sqrt_acp_prev[t]]
    # per batch element (test-harness-only host sync; not a training-step pattern).
    t = int(jax.random.randint(k_t, (), 1, n_timestep + 1))
    lo = float(sqrt_alphas_cumprod_prev[t - 1])
    hi = float(sqrt_alphas_cumprod_prev[t])
    u = jax.random.uniform(k_u, (B, 1), jnp.float32)
    csac = (lo + (hi - lo) * u).astype(jnp.float32)                # .view(b, -1)

    # deterministic denoise_fn stand-in parameters: 1x1 conv (2C -> C), bias,
    # noise-level embedding weight
    w = 0.1 * jax.random.normal(k_w, (C, 2 * C), jnp.float32)
    bias = 0.1 * jax.random.normal(k_b, (C,), jnp.float32)
    wt = 0.1 * jax.random.normal(k_wt, (C,), jnp.float32)

    loss_fn = jax.jit(gaussian_diffusion_p_losses)
    loss = loss_fn(hr, sr, noise, csac, w, bias, wt)
    loss = jax.block_until_ready(loss)

    # pure-JAX reference (matches the PyTorch p_losses semantics)
    c = csac[:, :, None, None]
    x_noisy = c * hr + jnp.sqrt(1.0 - c ** 2) * noise
    x_cat = jnp.concatenate([sr, x_noisy], axis=1)
    y = (jnp.einsum('oc,bchw->bohw', w, x_cat)
         + bias[None, :, None, None]
         + (csac * wt[None, :])[:, :, None, None])
    ref = jnp.sum(jnp.abs(noise - y))

    # tolerance accounts for MXU default-precision truncation / accumulation-order
    # differences vs. the XLA reference
    assert np.allclose(np.asarray(loss), np.asarray(ref), rtol=1e-3, atol=1e-3), (loss, ref)

    print("KERNEL_OK")
</pallas_src>

<mosaic_0001>
module attributes {stable_mosaic.version = 11 : i64} {
  func.func @diffusion_p_losses_kernel(%arg0: memref<2xf32, #tpu.memory_space<smem>>, %arg1: memref<8x256xf32, #tpu.memory_space<vmem>>, %arg2: memref<8x256xf32, #tpu.memory_space<vmem>>, %arg3: memref<8x256xf32, #tpu.memory_space<vmem>>, %arg4: memref<4x8xf32, #tpu.memory_space<vmem>>, %arg5: memref<4x1xf32, #tpu.memory_space<vmem>>, %arg6: memref<4x1xf32, #tpu.memory_space<vmem>>, %arg7: memref<1x1xf32, #tpu.memory_space<smem>>) attributes {dimension_semantics = [], scalar_prefetch = 0 : i64, scratch_operands = 0 : i64, tpu.core_type = #tpu.core_type<tc>} {
    %c0 = arith.constant 0 : index
    %c0_0 = arith.constant 0 : index
    %0 = vector.load %arg1[%c0, %c0_0] : memref<8x256xf32, #tpu.memory_space<vmem>>, vector<8x256xf32>
    %c0_1 = arith.constant 0 : index
    %c0_2 = arith.constant 0 : index
    %1 = vector.load %arg2[%c0_1, %c0_2] : memref<8x256xf32, #tpu.memory_space<vmem>>, vector<8x256xf32>
    %c0_3 = arith.constant 0 : index
    %c0_4 = arith.constant 0 : index
    %2 = vector.load %arg3[%c0_3, %c0_4] : memref<8x256xf32, #tpu.memory_space<vmem>>, vector<8x256xf32>
    %c0_5 = arith.constant 0 : index
    %c0_6 = arith.constant 0 : index
    %3 = vector.load %arg4[%c0_5, %c0_6] : memref<4x8xf32, #tpu.memory_space<vmem>>, vector<4x8xf32>
    %c0_7 = arith.constant 0 : index
    %c0_8 = arith.constant 0 : index
    %4 = vector.load %arg5[%c0_7, %c0_8] : memref<4x1xf32, #tpu.memory_space<vmem>>, vector<4x1xf32>
    %c0_9 = arith.constant 0 : index
    %c0_10 = arith.constant 0 : index
    %5 = vector.load %arg6[%c0_9, %c0_10] : memref<4x1xf32, #tpu.memory_space<vmem>>, vector<4x1xf32>
    %c0_11 = arith.constant 0 : index
    %6 = memref.load %arg0[%c0_11] : memref<2xf32, #tpu.memory_space<smem>>
    %7 = vector.broadcast %6 : f32 to vector<1x256xf32>
    %8 = arith.mulf %7, %7 : vector<1x256xf32>
    %cst = arith.constant 1.000000e+00 : f32
    %9 = vector.broadcast %cst : f32 to vector<1x256xf32>
    %10 = arith.subf %9, %8 : vector<1x256xf32>
    %cst_12 = arith.constant 0.000000e+00 : f32
    %11 = vector.broadcast %cst_12 : f32 to vector<1x256xf32>
    %12 = arith.maximumf %10, %11 : vector<1x256xf32>
    %13 = math.sqrt %12 : vector<1x256xf32>
    %14 = vector.extract_strided_slice %0 {offsets = [0, 0], sizes = [4, 256], strides = [1, 1]} : vector<8x256xf32> to vector<4x256xf32>
    %15 = vector.extract_strided_slice %1 {offsets = [0, 0], sizes = [4, 256], strides = [1, 1]} : vector<8x256xf32> to vector<4x256xf32>
    %16 = vector.extract_strided_slice %2 {offsets = [0, 0], sizes = [4, 256], strides = [1, 1]} : vector<8x256xf32> to vector<4x256xf32>
    %17 = vector.broadcast %7 : vector<1x256xf32> to vector<4x256xf32>
    %18 = arith.mulf %17, %15 : vector<4x256xf32>
    %19 = vector.broadcast %13 : vector<1x256xf32> to vector<4x256xf32>
    %20 = arith.mulf %19, %16 : vector<4x256xf32>
    %21 = arith.addf %18, %20 : vector<4x256xf32>
    %22 = tpu.concatenate %14, %21 in 0 : vector<4x256xf32>, vector<4x256xf32> -> vector<8x256xf32>
    %cst_13 = arith.constant dense<0.000000e+00> : vector<4x256xf32>
    %23 = tpu.matmul %3, %22, %cst_13 {dimension_numbers = #tpu.dot_dimension_numbers<[1], [0], [0], [1], [0, 0, 1, 1], [], []>} : vector<4x8xf32>, vector<8x256xf32>, vector<4x256xf32> -> vector<4x256xf32>
    %24 = vector.broadcast %4 : vector<4x1xf32> to vector<4x256xf32>
    %25 = arith.addf %23, %24 : vector<4x256xf32>
    %26 = vector.broadcast %6 : f32 to vector<4x1xf32>
    %27 = arith.mulf %5, %26 : vector<4x1xf32>
    %28 = vector.broadcast %27 : vector<4x1xf32> to vector<4x256xf32>
    %29 = arith.addf %25, %28 : vector<4x256xf32>
    %30 = arith.subf %16, %29 : vector<4x256xf32>
    %31 = math.absf %30 : vector<4x256xf32>
    %32 = vector.shape_cast %31 : vector<4x256xf32> to vector<1x4x256xf32>
    %cst_14 = arith.constant dense<0.000000e+00> : vector<1xf32>
    %33 = vector.multi_reduction <add>, %32, %cst_14 [1, 2] : vector<1x4x256xf32> to vector<1xf32>
    %34 = vector.shape_cast %33 : vector<1xf32> to vector<1x1x1xf32>
    %35 = vector.extract %34[0, 0, 0] : f32 from vector<1x1x1xf32>
    %cst_15 = arith.constant 0.000000e+00 : f32
    %36 = arith.addf %cst_15, %35 : f32
    %c1 = arith.constant 1 : index
    %37 = memref.load %arg0[%c1] : memref<2xf32, #tpu.memory_space<smem>>
    %38 = vector.broadcast %37 : f32 to vector<1x256xf32>
    %39 = arith.mulf %38, %38 : vector<1x256xf32>
    %cst_16 = arith.constant 1.000000e+00 : f32
    %40 = vector.broadcast %cst_16 : f32 to vector<1x256xf32>
    %41 = arith.subf %40, %39 : vector<1x256xf32>
    %cst_17 = arith.constant 0.000000e+00 : f32
    %42 = vector.broadcast %cst_17 : f32 to vector<1x256xf32>
    %43 = arith.maximumf %41, %42 : vector<1x256xf32>
    %44 = math.sqrt %43 : vector<1x256xf32>
    %45 = vector.extract_strided_slice %0 {offsets = [4, 0], sizes = [4, 256], strides = [1, 1]} : vector<8x256xf32> to vector<4x256xf32>
    %46 = vector.extract_strided_slice %1 {offsets = [4, 0], sizes = [4, 256], strides = [1, 1]} : vector<8x256xf32> to vector<4x256xf32>
    %47 = vector.extract_strided_slice %2 {offsets = [4, 0], sizes = [4, 256], strides = [1, 1]} : vector<8x256xf32> to vector<4x256xf32>
    %48 = vector.broadcast %38 : vector<1x256xf32> to vector<4x256xf32>
    %49 = arith.mulf %48, %46 : vector<4x256xf32>
    %50 = vector.broadcast %44 : vector<1x256xf32> to vector<4x256xf32>
    %51 = arith.mulf %50, %47 : vector<4x256xf32>
    %52 = arith.addf %49, %51 : vector<4x256xf32>
    %53 = tpu.concatenate %45, %52 in 0 : vector<4x256xf32>, vector<4x256xf32> -> vector<8x256xf32>
    %cst_18 = arith.constant dense<0.000000e+00> : vector<4x256xf32>
    %54 = tpu.matmul %3, %53, %cst_18 {dimension_numbers = #tpu.dot_dimension_numbers<[1], [0], [0], [1], [0, 0, 1, 1], [], []>} : vector<4x8xf32>, vector<8x256xf32>, vector<4x256xf32> -> vector<4x256xf32>
    %55 = vector.broadcast %4 : vector<4x1xf32> to vector<4x256xf32>
    %56 = arith.addf %54, %55 : vector<4x256xf32>
    %57 = vector.broadcast %37 : f32 to vector<4x1xf32>
    %58 = arith.mulf %5, %57 : vector<4x1xf32>
    %59 = vector.broadcast %58 : vector<4x1xf32> to vector<4x256xf32>
    %60 = arith.addf %56, %59 : vector<4x256xf32>
    %61 = arith.subf %47, %60 : vector<4x256xf32>
    %62 = math.absf %61 : vector<4x256xf32>
    %63 = vector.shape_cast %62 : vector<4x256xf32> to vector<1x4x256xf32>
    %cst_19 = arith.constant dense<0.000000e+00> : vector<1xf32>
    %64 = vector.multi_reduction <add>, %63, %cst_19 [1, 2] : vector<1x4x256xf32> to vector<1xf32>
    %65 = vector.shape_cast %64 : vector<1xf32> to vector<1x1x1xf32>
    %66 = vector.extract %65[0, 0, 0] : f32 from vector<1x1x1xf32>
    %67 = arith.addf %36, %66 : f32
    %c0_20 = arith.constant 0 : index
    %c0_21 = arith.constant 0 : index
    %68 = memref.load %arg7[%c0_20, %c0_21] : memref<1x1xf32, #tpu.memory_space<smem>>
    memref.store %67, %arg7[%c0_20, %c0_21] : memref<1x1xf32, #tpu.memory_space<smem>>
    return
  }
}

</mosaic_0001>

<bundles_post_ra>
// kernel: gaussian_diffusion_p_losses.1
= control target key start
LH: loop header
LB: loop body
LE: loop exit
PB: predicated region body
PF: predicated region fallthrough
CT: control target
= control target key end

     0   :  { %12 = vsyncpa [#allocation4], 0  ;;  %s463_s0 = inlined_call_operand.vmem [shape: f32[2], index: 0, kind: input, shape index: {}]   ;;  %s464_s1 = inlined_call_operand.vmem [shape: f32[8,256], index: 1, kind: input, shape index: {}]   ;;  %s465_s2 = inlined_call_operand.vmem [shape: f32[8,256], index: 2, kind: input, shape index: {}]   ;;  %s466_s3 = inlined_call_operand.vmem [shape: f32[8,256], index: 3, kind: input, shape index: {}]   ;;  %s467_s4 = inlined_call_operand.vmem [shape: f32[4,8], index: 4, kind: input, shape index: {}]   ;;  %s468_s5 = inlined_call_operand.vmem [shape: f32[4,1], index: 5, kind: input, shape index: {}]   ;;  %s469_s6 = inlined_call_operand.vmem [shape: f32[4,1], index: 6, kind: input, shape index: {}]   ;;  %s470_s7 = inlined_call_operand.hbm [shape: f32[1,1], index: 7, kind: output, shape index: {}]  }
   0x1   :  { %13 = vsyncpa [#allocation3], 0  ;;  %s20_s26 = sshll.u32 %s463_s0, 4  ;;  %s21_s26 = int_to_ptr.vmem [resolvable:$true] %s20_s26 }
   0x2   :  { %s348_s27 = scalar_lea.vmem %s21_s26, 16  ;;  %p353_p1 = scmp.lt.s32.totalorder %s21_s26, %s21_s26 }
   0x3   :  { %p349_p0 = scmp.ne.s32.totalorder %s21_s26, %s348_s27  ;;  %p354_p2 = scmp.lt.s32.totalorder %s348_s27, %s348_s27 }
   0x5   :  { %p355_p3 = por %p354_p2, %p353_p1 }
   0x7   :  { %p356_p4 = pnand %p355_p3, %p349_p0 }
   0x9   :  { %359 = shalt.err (!%p356_p4)
}
   0xa   :  { %s372_s28 = smov [#allocation2]  }
   0xb   :  { %23 = dma.vmem_to_smem %s21_s26, 16, %s372_s28, [#allocation4]  }
   0xc   :  { %368 = dma.done.wait [#allocation4], 16  }
   0xd   :  { %369 = vsyncadd [#allocation4], 4294967280 }
   0xe   :  { %39 = sfence }
   0xf   :  { %s332_s29 = sld [smem:[#allocation2 + $0x1]]  ;;  %v373_v0 = vmov 0.0   ;;  %v374_v1 = vmov 0   ;;  %v47_v2 = vld [vmem:[%s468_s5] sm:$0xf]  ;;  %v43_v14 = vld [vmem:[%s465_s2 + $0x8] sm:$0xff] }
  0x10   :  { %271 = vmatprep.mubr.f32.mxu1 %v373_v0  ;;  %s49_s30 = sld [smem:[#allocation2]]  ;;  %149 = vmatprep.mubr.f32.mxu0 %v373_v0  ;;  %v48_v3 = vld [vmem:[%s469_s6] sm:$0xf]  ;;  %v41_v18 = vld [vmem:[%s464_s1 + $0x8] sm:$0xff]  ;;  %vm73_vm4 = vcmask 1043456   ;;  %vm81_vm5 = vcmask 64512  }
  0x11   :  { %342 = vset.pattern.permute.xlu0 %v374_v1  ;;  %343 = vset.pattern.permute.xlu1 %v374_v1  ;;  %v42_v17 = vld [vmem:[%s465_s2] sm:$0xff]  ;;  %v437_v20 = vld [vmem:[%s466_s3 + $0x8] sm:$0xff]  ;;  %v202_v31 = vrot.slane %v41_v18, 4  ;;  %s375_s22 = smov [#allocation5]  }
  0x12   :  { %78 = vperm.xlu0 %342, %v47_v2   ;;  %v40_v22 = vld [vmem:[%s464_s1] sm:$0xff] }
  0x13   :  { %v44_v23 = vld [vmem:[%s466_s3] sm:$0xff]  ;;  %v201_v33 = vrot.slane %v40_v22, 4 }
  0x14   :  { %v46_v44 = vld [vmem:[%s467_s4] sm:$0xf] }
  0x15   :  { %v182_v4 = vstv %s332_s29 }
  0x16   :  { %v183_v5 = vmul.f32 %v182_v4, %v182_v4  ;;  %v278_v6 = vmul.f32 %v182_v4, %v48_v3  ;;  %v50_v7 = vstv %s49_s30  ;;  %v194_v21 = vmul.f32 %v182_v4, %v43_v14 }
  0x17   :  { %v51_v9 = vmul.f32 %v50_v7, %v50_v7  ;;  %v156_v10 = vmul.f32 %v50_v7, %v48_v3  ;;  %v193_v26 = vmul.f32 %v182_v4, %v42_v17  ;;  %v62_v35 = vmul.f32 %v50_v7, %v43_v14 }
  0x18   :  { %v184_v8 = vsub.f32 1.0, %v183_v5  ;;  %281 = vperm.xlu0 %342, %v278_v6   ;;  %v61_v36 = vmul.f32 %v50_v7, %v42_v17 }
  0x19   :  { %v52_v12 = vsub.f32 1.0, %v51_v9  ;;  %159 = vperm.xlu1 %343, %v156_v10  }
  0x1a   :  { %v185_v11 = vmax.f32 %v184_v8, 0.0 }
  0x1b   :  { %v53_v13 = vmax.f32 %v52_v12, 0.0 }
  0x1c   :  { %344 = vrsqrt.f32 %v185_v11  ;;  %vm188_vm0 = vcmp.eq.f32.partialorder %v185_v11, inf  ;;  %v191_v16 = vand.u32 2147483648, %v185_v11  ;;  %vm190_vm1 = vcmp.eq.f32.partialorder %v185_v11, 0.0 }
  0x1d   :  { %346 = vrsqrt.f32 %v53_v13  ;;  %vm56_vm2 = vcmp.eq.f32.partialorder %v53_v13, inf  ;;  %v59_v27 = vand.u32 2147483648, %v53_v13  ;;  %vm58_vm3 = vcmp.eq.f32.partialorder %v53_v13, 0.0 }
  0x29   :  { %v345_v15 = vpop.eup %344 }
  0x2a   :  { %v187_v19 = vmul.f32 %v345_v15, %v185_v11  ;;  %v347_v24 = vpop.eup %346 }
  0x2b   :  { %v55_v29 = vmul.f32 %v347_v24, %v53_v13 }
  0x2c   :  { %v189_v25 = vsel %vm188_vm0, %v185_v11, %v187_v19 }
  0x2d   :  { %v192_v28 = vsel %vm190_vm1, %v191_v16, %v189_v25  ;;  %v57_v34 = vsel %vm56_vm2, %v53_v13, %v55_v29 }
  0x2e   :  { %v196_v30 = vmul.f32 %v192_v28, %v437_v20  ;;  %v195_v32 = vmul.f32 %v192_v28, %v44_v23  ;;  %v60_v39 = vsel %vm58_vm3, %v59_v27, %v57_v34 }
  0x2f   :  { %v64_v40 = vmul.f32 %v60_v39, %v437_v20  ;;  %v63_v41 = vmul.f32 %v60_v39, %v44_v23 }
  0x30   :  { %v198_v37 = vadd.f32 %v196_v30, %v194_v21  ;;  %v197_v38 = vadd.f32 %v195_v32, %v193_v26 }
  0x31   :  { %v66_v45 = vadd.f32 %v64_v40, %v62_v35  ;;  %v65_v46 = vadd.f32 %v63_v41, %v61_v36 }
  0x32   :  { %v206_v42 = vsel %vm73_vm4, %v202_v31, %v198_v37  ;;  %v205_v43 = vsel %vm73_vm4, %v201_v33, %v197_v38 }
  0x33   :  { %237 = vmatprep.subr.mxu1 %v206_v42  ;;  %v70_v47 = vrot.slane %v66_v45, 4  ;;  %v69_v48 = vrot.slane %v65_v46, 4 }
  0x34   :  { %238 = vmatpush1.msra.mxu1 %v205_v43 }
  0x35   :  { %333 = vmatmul.mubr.msk.f32.vlgmr.msra.gmra.mxu1 %vm81_vm5, %v46_v44  ;;  %v75_v49 = vsel %vm73_vm4, %v41_v18, %v70_v47  ;;  %v74_v50 = vsel %vm73_vm4, %v40_v22, %v69_v48 }
  0x36   :  { %115 = vmatprep.subr.mxu0 %v75_v49 }
  0x37   :  { %116 = vmatpush1.msra.mxu0 %v74_v50 }
  0x38   :  { %331 = vmatmul.mubr.msk.f32.vlgmr.msra.gmra.mxu0 %vm81_vm5, %v46_v44 }
  0x8d   :  { %v79_v51 = vpop.permute.xlu0 %78 }
  0x93   :  { %v282_v54 = vpop.permute.xlu0 %281 }
  0x94   :  { %v160_v61 = vpop.permute.xlu1 %159 }
  0xf5   :  { %v273_v52 = vpop.f32.mrf.mxu1 }
  0xf6   :  { %v274_v53 = vadd.f32 %v273_v52, %v79_v51 }
  0xf7   :  { %v275_v55 = vpop.f32.mrf.mxu1 }
  0xf8   :  { %v284_v56 = vadd.f32 %v282_v54, %v274_v53  ;;  %v276_v57 = vadd.f32 %v275_v55, %v79_v51  ;;  %v151_v59 = vpop.f32.mrf.mxu0 }
  0xf9   :  { %v152_v62 = vadd.f32 %v151_v59, %v79_v51 }
  0xfa   :  { %v288_v58 = vrot.slane %v284_v56, 4  ;;  %v285_v60 = vadd.f32 %v282_v54, %v276_v57  ;;  %v153_v1 = vpop.f32.mrf.mxu0 }
  0xfb   :  { %v162_v2 = vadd.f32 %v160_v61, %v152_v62  ;;  %v154_v3 = vadd.f32 %v153_v1, %v79_v51 }
  0xfc   :  { %v292_v63 = vsub.f32 %v44_v23, %v288_v58  ;;  %v289_v0 = vrot.slane %v285_v60, 4 }
  0xfd   :  { %v164_v6 = vsub.f32 %v44_v23, %v162_v2  ;;  %v163_v7 = vadd.f32 %v160_v61, %v154_v3 }
  0xfe   :  { %v293_v4 = vsub.f32 %v437_v20, %v289_v0  ;;  %v294_v5 = vand.u32 2147483647, %v292_v63 }
  0xff   :  { %v166_v10 = vand.u32 2147483647, %v164_v6  ;;  %v165_v11 = vsub.f32 %v437_v20, %v163_v7 }
 0x100   :  { %v295_v8 = vand.u32 2147483647, %v293_v4  ;;  %v298_v9 = vrot.slane %v294_v5, 4 }
 0x101   :  { %v167_v13 = vand.u32 2147483647, %v165_v11  ;;  %v168_v16 = vsel %vm73_vm4, %v166_v10, 0.0 }
 0x102   :  { %v299_v12 = vrot.slane %v295_v8, 4  ;;  %v302_v14 = vsel %vm73_vm4, %v298_v9, 0.0 }
 0x103   :  { %v169_v17 = vsel %vm73_vm4, %v167_v13, 0.0 }
 0x104   :  { %v303_v15 = vsel %vm73_vm4, %v299_v12, 0.0  ;;  %v170_v19 = vadd.f32 %v169_v17, %v168_v16 }
 0x105   :  { %v304_v18 = vadd.f32 %v303_v15, %v302_v14 }
 0x106   :  { %171 = vadd.xlane.f32.xlu1 %v170_v19 }
 0x107   :  { %305 = vadd.xlane.f32.xlu0 %v304_v18 }
 0x18f   :  { %v172_v22 = vpop.xlane.xlu1 %171 }
 0x190   :  { %v306_v21 = vpop.xlane.xlu0 %305  ;;  %v173_v24 = vrot.slane %v172_v22, 4 }
 0x191   :  { %v307_v23 = vrot.slane %v306_v21, 4 }
 0x192   :  { %v174_v20 = vadd.f32 %v173_v24, %v172_v22 }
 0x193   :  { %v308_v25 = vadd.f32 %v307_v23, %v306_v21 }
 0x194   :  { %v175_v27 = vrot.slane %v174_v20, 2 }
 0x195   :  { %v309_v26 = vrot.slane %v308_v25, 2 }
 0x196   :  { %v176_v29 = vadd.f32 %v175_v27, %v174_v20 }
 0x197   :  { %v310_v28 = vadd.f32 %v309_v26, %v308_v25 }
 0x198   :  { %v177_v31 = vrot.slane %v176_v29, 1 }
 0x199   :  { %v311_v30 = vrot.slane %v310_v28, 1 }
 0x19a   :  { %v178_v33 = vadd.f32 %v177_v31, %v176_v29 }
 0x19b   :  { %v312_v32 = vadd.f32 %v311_v30, %v310_v28 }
 0x19c   :  { %334 = vpush %v178_v33 }
 0x19d   :  { %336 = vpush %v312_v32 }
 0x1cd   :  { %s335_s3 = spop %334 }
 0x1ce   :  { %s337_s4 = spop %336 }
 0x1cf   :  { %s314_s21 = sadd.f32 %s337_s4, %s335_s3 }
 0x1d1   :  { %316 = sst [smem:[#allocation5]] %s314_s21 }
 0x1d2   :  { %324 = dma.smem_to_hbm %s375_s22, 16, %s470_s7, [#allocation3]  }
 0x1d3   :  { %370 = dma.done.wait [#allocation3], 16  }
 0x1d4   :  { %371 = vsyncadd [#allocation3], 4294967280 }
 0x1d5   :  { %328 = sfence }
 0x1d6   :  { %329 = vsyncpa [#allocation3], 1 }
 0x1d7   :  { %330 = vsyncpa [#allocation4], 1 }

</bundles_post_ra>
